<compile_context>
chip_gen: v7x
topology: tpu7x:2x2x1
jax: 0.10.0
libtpu: 0.0.40
codegen_flags: <defaults>
</compile_context>

<pallas_src>
import functools
import math

import jax
import jax.numpy as jnp
from jax import lax
from jax.experimental import pallas as pl
from jax.experimental.pallas import tpu as pltpu


def _clamped_rmse_kernel(x_ref, y_ref, o_ref, *, inner_blocks, tile_rows,
                         valid_rows, do_clamp, max_error, needs_mask,
                         acc_rows):
    c = pl.program_id(0)   # partition axis ("parallel"; 2-way TC split)
    i = pl.program_id(1)   # streaming reduction axis ("arbitrary")

    @pl.when(i == 0)
    def _():
        o_ref[...] = jnp.zeros_like(o_ref)   # output block is VMEM-resident across i

    d = x_ref[...].astype(jnp.float32) - y_ref[...].astype(jnp.float32)
    sq = d * d                                           # MSELoss(reduction='none')
    if do_clamp:
        sq = jnp.minimum(sq, jnp.float32(max_error))     # torch.clamp(max=max_error)
    if needs_mask:
        # Zero rows past the true extent. Works both for the partial last
        # block and for duplicated (index-clamped) overhang blocks, because
        # the UNclamped logical block id is used: blk >= num_blocks implies
        # blk*tile_rows >= valid_rows, so the whole block is zeroed.
        blk = c * inner_blocks + i
        row_ids = lax.broadcasted_iota(jnp.int32, sq.shape, 0)
        sq = jnp.where(row_ids + blk * tile_rows < valid_rows, sq, 0.0)

    # Fold (tile_rows, 128) -> (acc_rows, 128): pure VPU adds over contiguous
    # sublane groups; acc_rows=64 gives 8 independent vreg add chains.
    o_ref[...] += jnp.sum(sq.reshape(-1, acc_rows, 128), axis=0)


def clamped_rmse_loss(inp, tgt, *, clamping=False, min_val=0.0,
                      max_val=float("inf"), tile_rows=8192):
    """Pallas equivalent of ClampedRMSELoss.forward. Returns a scalar."""
    assert inp.shape == tgt.shape
    max_error = (max_val - min_val) ** 2                 # always >= 0
    do_clamp = bool(clamping) and math.isfinite(max_error)  # clamp(max=inf) = no-op
    n_true = math.prod(inp.shape)
    # TODO(synk): n_true == 0 yields sqrt(0/0) = NaN, same as the torch reference.

    lanes = 128
    itemsize = jnp.dtype(inp.dtype).itemsize
    sub = 8 * max(1, 4 // itemsize)       # native sublane tile: 8 f32 / 16 bf16 / 32 i8
    align = lanes * sub

    def _sq(a, b):
        dd = a.astype(jnp.float32) - b.astype(jnp.float32)
        s = dd * dd
        if do_clamp:
            s = jnp.minimum(s, jnp.float32(max_error))
        return s

    x = inp.reshape(-1)
    y = tgt.reshape(-1)

    n_main = (n_true // align) * align
    tail = n_true - n_main

    # Tail (< align elements): tiny wrapper-side jnp expression -- avoids the
    # full-array pad copy (2x HBM traffic) of the previous version.
    tail_sum = jnp.float32(0.0)
    if tail:
        tail_sum = jnp.sum(_sq(x[n_main:], y[n_main:]))

    if n_main == 0:
        total = tail_sum                                  # degenerate tiny input
    else:
        xm = (x if tail == 0 else x[:n_main]).reshape(-1, lanes)
        ym = (y if tail == 0 else y[:n_main]).reshape(-1, lanes)
        rows = xm.shape[0]                                # multiple of `sub`

        # Block rows: big streaming tiles, capped so 2 inputs x 2 buffers stay
        # comfortably inside VMEM on every generation.
        tr = min(tile_rows, rows)
        tr = min(tr, (12 << 20) // (lanes * itemsize))    # <= 12 MiB per block
        tr = max(sub, tr - (tr % sub))

        g = pl.cdiv(rows, tr)                             # total row blocks
        num_parts = 2 if g >= 2 else 1                    # unconditional 2-TC split
        inner = pl.cdiv(g, num_parts)
        needs_mask = (rows % tr != 0) or (num_parts * inner != g)
        acc_rows = 64 if tr % 64 == 0 else sub            # wide accumulator when possible

        kernel = functools.partial(
            _clamped_rmse_kernel,
            inner_blocks=inner,
            tile_rows=tr,
            valid_rows=rows,
            do_clamp=do_clamp,
            max_error=float(max_error) if do_clamp else 0.0,
            needs_mask=needs_mask,
            acc_rows=acc_rows,
        )

        last_blk = g - 1
        in_idx = lambda c, i: (jnp.minimum(c * inner + i, last_blk), 0)

        block_bytes = tr * lanes * itemsize
        # 2 inputs x 2 pipeline buffers + headroom; explicit so v5e's 16 MiB
        # default scoped limit does not reject the larger tiles.
        vmem_limit = int(min(max(4 * block_bytes + (8 << 20), 32 << 20), 56 << 20))

        partials = pl.pallas_call(
            kernel,
            out_shape=jax.ShapeDtypeStruct((acc_rows * num_parts, lanes),
                                           jnp.float32),
            grid_spec=pltpu.PrefetchScalarGridSpec(
                num_scalar_prefetch=0,
                grid=(num_parts, inner),
                in_specs=[
                    pl.BlockSpec((tr, lanes), in_idx),
                    pl.BlockSpec((tr, lanes), in_idx),
                ],
                out_specs=pl.BlockSpec((acc_rows, lanes), lambda c, i: (c, 0)),
            ),
            compiler_params=pltpu.CompilerParams(
                dimension_semantics=("parallel", "arbitrary"),
                vmem_limit_bytes=vmem_limit,
            ),
        )(xm, ym)

        # Tiny final combine (<= 2*64*128 elements) + tail, outside the kernel.
        total = jnp.sum(partials) + tail_sum

    return jnp.sqrt(total / jnp.float32(n_true))


def _reference(inp, tgt, *, clamping=False, min_val=0.0, max_val=float("inf")):
    out = (inp.astype(jnp.float32) - tgt.astype(jnp.float32)) ** 2
    if clamping:
        out = jnp.minimum(out, (max_val - min_val) ** 2)
    return jnp.sqrt(out.mean())


if __name__ == "__main__":
    key = jax.random.PRNGKey(0)
    k1, k2, k3, k4, k5, k6, k7, k8 = jax.random.split(key, 8)

    # 1) NCHW-like regression output / target, default config (clamping=False).
    x = jax.random.normal(k1, (2, 4, 16, 16), dtype=jnp.float32)
    t = jax.random.normal(k2, (2, 4, 16, 16), dtype=jnp.float32)
    got = jax.block_until_ready(clamped_rmse_loss(x, t))
    want = _reference(x, t)
    assert jnp.allclose(got, want, rtol=1e-5, atol=1e-6), (got, want)

    # 2) clamping config.
    got_c = jax.block_until_ready(
        clamped_rmse_loss(x, t, clamping=True, min_val=0.0, max_val=1.0))
    want_c = _reference(x, t, clamping=True, min_val=0.0, max_val=1.0)
    assert jnp.allclose(got_c, want_c, rtol=1e-5, atol=1e-6), (got_c, want_c)

    # 3) ragged last block + unconditional 2-part split (24 rows, 16-row tiles).
    x3 = jax.random.normal(k3, (2, 3, 4, 128), dtype=jnp.float32)
    t3 = jax.random.normal(k4, (2, 3, 4, 128), dtype=jnp.float32)
    got_m = jax.block_until_ready(clamped_rmse_loss(x3, t3, tile_rows=16))
    want_m = _reference(x3, t3)
    assert jnp.allclose(got_m, want_m, rtol=1e-5, atol=1e-6), (got_m, want_m)

    # 4) odd block count (g=3) -> clamped/duplicated overhang block is masked.
    got_o = jax.block_until_ready(clamped_rmse_loss(x3, t3, tile_rows=8))
    assert jnp.allclose(got_o, want_m, rtol=1e-5, atol=1e-6), (got_o, want_m)

    # 5) multi-step inner loop + wide (64,128) accumulator + 2-part split.
    x5 = jax.random.normal(k5, (16, 4, 32, 32), dtype=jnp.float32)
    t5 = jax.random.normal(k6, (16, 4, 32, 32), dtype=jnp.float32)
    got_w = jax.block_until_ready(clamped_rmse_loss(x5, t5, tile_rows=128))
    want_w = _reference(x5, t5)
    assert jnp.allclose(got_w, want_w, rtol=1e-5, atol=1e-6), (got_w, want_w)

    # 6) unaligned numel (1250): kernel main part + wrapper-side tail sum.
    x6 = jax.random.normal(k7, (5, 250), dtype=jnp.float32)
    t6 = jax.random.normal(k8, (5, 250), dtype=jnp.float32)
    got_t = jax.block_until_ready(
        clamped_rmse_loss(x6, t6, clamping=True, min_val=0.0, max_val=1.5))
    want_t = _reference(x6, t6, clamping=True, min_val=0.0, max_val=1.5)
    assert jnp.allclose(got_t, want_t, rtol=1e-5, atol=1e-6), (got_t, want_t)

    print("KERNEL_OK")
</pallas_src>

<mosaic_0001>
module attributes {stable_mosaic.version = 11 : i64} {
  func.func @_clamped_rmse_kernel(%arg0: i32, %arg1: i32, %arg2: memref<16x128xf32, #tpu.memory_space<vmem>>, %arg3: memref<16x128xf32, #tpu.memory_space<vmem>>, %arg4: memref<8x128xf32, #tpu.memory_space<vmem>>) attributes {dimension_semantics = [#tpu.dimension_semantics<parallel>, #tpu.dimension_semantics<arbitrary>], iteration_bounds = array<i64: 1, 1>, scalar_prefetch = 0 : i64, scratch_operands = 0 : i64, tpu.core_type = #tpu.core_type<tc>, window_params = [{transform_indices = @transform_0, window_bounds = array<i64: 16, 128>}, {transform_indices = @transform_1, window_bounds = array<i64: 16, 128>}, {transform_indices = @transform_2, window_bounds = array<i64: 8, 128>}]} {
    %c0_i32 = arith.constant 0 : i32
    %0 = arith.cmpi eq, %arg1, %c0_i32 : i32
    %1 = arith.extui %0 : i1 to i32
    %c0_i32_0 = arith.constant 0 : i32
    %2 = arith.cmpi ne, %1, %c0_i32_0 : i32
    scf.if %2 {
      %cst_8 = arith.constant 0.000000e+00 : f32
      %12 = vector.broadcast %cst_8 : f32 to vector<8x128xf32>
      %c0_9 = arith.constant 0 : index
      %c0_10 = arith.constant 0 : index
      %13 = vector.load %arg4[%c0_9, %c0_10] : memref<8x128xf32, #tpu.memory_space<vmem>>, vector<8x128xf32>
      tpu.vector_store %arg4[%c0_9, %c0_10], %12 {strides = array<i32>} : memref<8x128xf32, #tpu.memory_space<vmem>>, vector<8x128xf32>,
    } else {
    }
    %c0 = arith.constant 0 : index
    %c0_1 = arith.constant 0 : index
    %3 = vector.load %arg2[%c0, %c0_1] : memref<16x128xf32, #tpu.memory_space<vmem>>, vector<16x128xf32>
    %c0_2 = arith.constant 0 : index
    %c0_3 = arith.constant 0 : index
    %4 = vector.load %arg3[%c0_2, %c0_3] : memref<16x128xf32, #tpu.memory_space<vmem>>, vector<16x128xf32>
    %5 = arith.subf %3, %4 : vector<16x128xf32>
    %6 = arith.mulf %5, %5 : vector<16x128xf32>
    %c0_4 = arith.constant 0 : index
    %c0_5 = arith.constant 0 : index
    %7 = vector.load %arg4[%c0_4, %c0_5] : memref<8x128xf32, #tpu.memory_space<vmem>>, vector<8x128xf32>
    %8 = vector.shape_cast %6 : vector<16x128xf32> to vector<2x8x128xf32>
    %cst = arith.constant dense<0.000000e+00> : vector<8x128xf32>
    %9 = vector.multi_reduction <add>, %8, %cst [0] : vector<2x8x128xf32> to vector<8x128xf32>
    %10 = arith.addf %7, %9 : vector<8x128xf32>
    %c0_6 = arith.constant 0 : index
    %c0_7 = arith.constant 0 : index
    %11 = vector.load %arg4[%c0_6, %c0_7] : memref<8x128xf32, #tpu.memory_space<vmem>>, vector<8x128xf32>
    tpu.vector_store %arg4[%c0_6, %c0_7], %10 {strides = array<i32>} : memref<8x128xf32, #tpu.memory_space<vmem>>, vector<8x128xf32>,
    return
  }
  func.func @transform_0(%arg0: i32, %arg1: i32) -> (i32, i32) {
    %c1_i32 = arith.constant 1 : i32
    %0 = arith.muli %arg0, %c1_i32 : i32
    %1 = arith.addi %0, %arg1 : i32
    %c0_i32 = arith.constant 0 : i32
    %2 = arith.minsi %1, %c0_i32 : i32
    %c0_i32_0 = arith.constant 0 : i32
    %c0_i32_1 = arith.constant 0 : i32
    return %2, %c0_i32_0 : i32, i32
  }
  func.func @transform_1(%arg0: i32, %arg1: i32) -> (i32, i32) {
    %c1_i32 = arith.constant 1 : i32
    %0 = arith.muli %arg0, %c1_i32 : i32
    %1 = arith.addi %0, %arg1 : i32
    %c0_i32 = arith.constant 0 : i32
    %2 = arith.minsi %1, %c0_i32 : i32
    %c0_i32_0 = arith.constant 0 : i32
    %c0_i32_1 = arith.constant 0 : i32
    return %2, %c0_i32_0 : i32, i32
  }
  func.func @transform_2(%arg0: i32, %arg1: i32) -> (i32, i32) {
    %c0_i32 = arith.constant 0 : i32
    %c0_i32_0 = arith.constant 0 : i32
    return %arg0, %c0_i32 : i32, i32
  }
}

</mosaic_0001>

<bundles_post_ra>
// kernel: tpu_custom_call.1
= control target key start
LH: loop header
LB: loop body
LE: loop exit
PB: predicated region body
PF: predicated region fallthrough
CT: control target
= control target key end

     0   :  { %7 = vsyncpa [#allocation3], 0  ;;  %s231_s0 = inlined_call_operand.hbm [shape: f32[16,128], index: 0, kind: input, shape index: {}]   ;;  %s232_s1 = inlined_call_operand.hbm [shape: f32[16,128], index: 1, kind: input, shape index: {}]   ;;  %s233_s2 = inlined_call_operand.hbm [shape: f32[8,128], index: 2, kind: output, shape index: {}]  }
   0x1   :  { %8 = vsyncpa [#allocation6], 0 }
   0x2   :  { %9 = vsyncpa [#allocation4], 0  ;;  %s175_s9 = smov [#allocation2]   ;;  %s103_s13 = scalar_lea.hbm %s231_s0, 256 }
   0x3   :  { %s21_s10 = sshll.u32 %s175_s9, 4  ;;  %p104_p0 = scmp.ne.s32.totalorder %s231_s0, %s103_s13  ;;  %s22_s10 = int_to_ptr.vmem [resolvable:$true] %s21_s10 }
   0x4   :  { %p107_p1 = scmp.lt.u32.totalorder %s103_s13, %s231_s0 }
   0x6   :  { %p109_p2 = pnand %p107_p1, %p104_p0 }
   0x8   :  { %112 = shalt.err (!%p109_p2)
}
   0x9   :  { %s113_s18 = scalar_lea.vmem %s22_s10, 256  ;;  %p118_p4 = scmp.lt.s32.totalorder %s22_s10, %s22_s10 }
   0xa   :  { %p114_p3 = scmp.ne.s32.totalorder %s22_s10, %s113_s18  ;;  %p119_p5 = scmp.lt.s32.totalorder %s113_s18, %s113_s18 }
   0xc   :  { %p120_p6 = por %p119_p5, %p118_p4 }
   0xe   :  { %p121_p7 = pnand %p120_p6, %p114_p3 }
  0x10   :  { %124 = shalt.err (!%p121_p7)
}
  0x11   :  { %s176_s19 = smov 128   ;;  %s177_s20 = smov 8  }
  0x12   :  { %27 = dma.hbm_to_vmem [thread:$0]  %s231_s0, 256, %s22_s10, [#allocation3], %s176_s19, %s176_s19, %s177_s20  }
  0x13   :  { %s178_s23 = smov [#allocation5]   ;;  %s125_s27 = scalar_lea.hbm %s232_s1, 256 }
  0x14   :  { %s39_s24 = sshll.u32 %s178_s23, 4  ;;  %p126_p8 = scmp.ne.s32.totalorder %s232_s1, %s125_s27  ;;  %s40_s24 = int_to_ptr.vmem [resolvable:$true] %s39_s24 }
  0x15   :  { %p129_p9 = scmp.lt.u32.totalorder %s125_s27, %s232_s1 }
  0x17   :  { %p131_p10 = pnand %p129_p9, %p126_p8 }
  0x19   :  { %134 = shalt.err (!%p131_p10)
}
  0x1a   :  { %s135_s4 = scalar_lea.vmem %s40_s24, 256  ;;  %p140_p12 = scmp.lt.s32.totalorder %s40_s24, %s40_s24 }
  0x1b   :  { %p136_p11 = scmp.ne.s32.totalorder %s40_s24, %s135_s4  ;;  %p141_p13 = scmp.lt.s32.totalorder %s135_s4, %s135_s4 }
  0x1d   :  { %p142_p0 = por %p141_p13, %p140_p12 }
  0x1f   :  { %p143_p1 = pnand %p142_p0, %p136_p11 }
  0x21   :  { %146 = shalt.err (!%p143_p1)
}
  0x22   :  { %45 = dma.hbm_to_vmem [thread:$0]  %s232_s1, 256, %s40_s24, [#allocation6], %s176_s19, %s176_s19, %s177_s20  }
  0x23   :  { %169 = dma.done.wait [#allocation3], 256  }
  0x24   :  { %170 = vsyncadd [#allocation3], 4294967040 }
  0x25   :  { %171 = dma.done.wait [#allocation6], 256  }
  0x26   :  { %172 = vsyncadd [#allocation6], 4294967040  ;;  %v65_v0 = vld [vmem:[#allocation2] sm:$0xff]  ;;  %v66_v1 = vld [vmem:[#allocation2 + $0x8] sm:$0xff]  ;;  %s179_s6 = smov [#allocation7]  }
  0x27   :  { %v67_v2 = vld [vmem:[#allocation5] sm:$0xff]  ;;  %v68_v3 = vld [vmem:[#allocation5 + $0x8] sm:$0xff]  ;;  %s83_s7 = sshll.u32 %s179_s6, 4  ;;  %s84_s7 = int_to_ptr.vmem [resolvable:$true] %s83_s7 }
  0x28   :  { %v69_v4 = vsub.f32 %v65_v0, %v67_v2  ;;  %v70_v5 = vsub.f32 %v66_v1, %v68_v3  ;;  %s147_s8 = scalar_lea.vmem %s84_s7, 128  ;;  %p152_p3 = scmp.lt.s32.totalorder %s84_s7, %s84_s7 }
  0x29   :  { %p148_p2 = scmp.ne.s32.totalorder %s84_s7, %s147_s8  ;;  %p153_p4 = scmp.lt.s32.totalorder %s147_s8, %s147_s8 }
  0x2a   :  { %v71_v6 = vmul.f32 %v69_v4, %v69_v4  ;;  %v72_v7 = vmul.f32 %v70_v5, %v70_v5 }
  0x2b   :  { %p154_p5 = por %p153_p4, %p152_p3 }
  0x2c   :  { %v74_v8 = vadd.f32 %v72_v7, %v71_v6 }
  0x2d   :  { %p155_p6 = pnand %p154_p5, %p148_p2 }
  0x2e   :  { %76 = vst [vmem:[#allocation7] sm:$0xff] %v74_v8 }
  0x2f   :  { %158 = shalt.err (!%p155_p6)
}
  0x30   :  { %s159_s10 = scalar_lea.hbm %s233_s2, 128 }
  0x31   :  { %p160_p7 = scmp.ne.s32.totalorder %s233_s2, %s159_s10  ;;  %p163_p8 = scmp.lt.u32.totalorder %s159_s10, %s233_s2 }
  0x33   :  { %p165_p9 = pnand %p163_p8, %p160_p7 }
  0x35   :  { %168 = shalt.err (!%p165_p9)
}
  0x36   :  { %86 = dma.vmem_to_hbm [thread:$0]  %s84_s7, 128, %s233_s2, [#allocation4]  }
  0x37   :  { %173 = dma.done.wait [#allocation4], 128  }
  0x38   :  { %174 = vsyncadd [#allocation4], 4294967168 }
  0x39   :  { %90 = vsyncpa [#allocation3], 1 }
  0x3a   :  { %91 = vsyncpa [#allocation6], 1 }
  0x3b   :  { %92 = vsyncpa [#allocation4], 1 }

</bundles_post_ra>
